<compile_context>
chip_gen: v6e
topology: v6e:2x2x1
jax: 0.10.0
libtpu: 0.0.40
codegen_flags: <defaults>
</compile_context>

<pallas_src>
import functools

import jax
import jax.numpy as jnp
import numpy as np
from jax.experimental import pallas as pl
from jax.experimental.pallas import tpu as pltpu


def _round_up(x, m):
    return (x + m - 1) // m * m


# ----------------------------------------------------------------------------
# Fused kernel: pooling + per-rank gates + low-rank attention + residual +
# group mean.  One grid step per batch element; everything on (g*C, HW) tiles.
# ----------------------------------------------------------------------------
def _ld_fused_kernel(x_ref, p_ref, e_ref, s_ref, o_ref, *,
                     h, w, h_pad, c, group, rank, offs):
    GC = group * c
    gR = group * rank
    gRC = group * rank * c
    (o_wh, o_ww, o_bh, o_bw, o_t, o_m, o_wc, o_bc, o_gm) = offs

    x = x_ref[0].astype(jnp.float32)                       # (GC, HW) lane-dense
    smalls = s_ref[...]                                    # packed small constants

    whbd = smalls[o_wh:o_wh + gR, :GC]                     # block-diag Wh  (gR, GC)
    wwbd = smalls[o_ww:o_ww + gR, :GC]                     # block-diag Ww  (gR, GC)
    bhc = smalls[o_bh:o_bh + gR, :1]                       # (gR, 1)
    bwc = smalls[o_bw:o_bw + gR, :1]                       # (gR, 1)
    tbd = smalls[o_t:o_t + gRC, :GC]                       # xc replicator  (gRC, GC)
    mbd = smalls[o_m:o_m + gRC, :gR]                       # rank selector  (gRC, gR)
    wcbd = smalls[o_wc:o_wc + GC, :gRC]                    # block-diag Wc  (GC, gRC)
    bcm = smalls[o_bc:o_bc + GC, :gR]                      # bc (+ -1e30 off-diag mask)
    gm = smalls[o_gm:o_gm + c, :GC]                        # group-mean op  (C, GC)

    # --- directional pooling: one MXU pass of x against the combined operator
    xhw = jnp.dot(x, p_ref[...], preferred_element_type=jnp.float32)    # (GC, H+W)
    xh = xhw[:, :h]                                                       # mean over W
    xw = xhw[:, h:h + w]                                                  # mean over H
    xc = jnp.mean(xh, axis=1, keepdims=True)                              # (GC, 1)

    # --- per-rank H / W gates for every group member (tiny MXU matmuls) ---
    h_att = jax.nn.sigmoid(
        jnp.dot(whbd, xh, preferred_element_type=jnp.float32) + bhc)      # (gR, H)
    w_att = jax.nn.sigmoid(
        jnp.dot(wwbd, xw, preferred_element_type=jnp.float32) + bwc)      # (gR, W)

    # Expand back to the flattened spatial grid (lane-dense MXU matmuls):
    #   hw_att[gR, h*W + w] = h_att[gR, h] * w_att[gR, w]
    e = e_ref[...]
    hw_att = (jnp.dot(h_att, e[:h, :], preferred_element_type=jnp.float32) *
              jnp.dot(w_att, e[h_pad:h_pad + w, :],
                      preferred_element_type=jnp.float32))                # (gR, HW)

    # --- per-rank channel gates -> block-diagonal (GC, gR) gate matrix ---
    # (off-diagonal blocks are exactly zero: pre-activation is 0 there and the
    #  bias constant holds -1e30, so sigmoid -> 0)
    v = jnp.dot(tbd, xc, preferred_element_type=jnp.float32)              # (gRC, 1)
    xcrep = v * mbd                                                       # (gRC, gR)
    cmat = jax.nn.sigmoid(
        jnp.dot(wcbd, xcrep, preferred_element_type=jnp.float32) + bcm)   # (GC, gR)

    # --- rank contraction on the MXU, one fused VPU pass, group mean on MXU --
    att = jnp.dot(cmat, hw_att, preferred_element_type=jnp.float32)       # (GC, HW)
    y = x * (att * (1.0 / rank) + 1.0)                                    # x*A + x
    o_ref[0] = jnp.dot(gm, y, preferred_element_type=jnp.float32)         # (C, HW)


# ----------------------------------------------------------------------------
# Constant pooling / expansion operators.
# ----------------------------------------------------------------------------
def _pool_expand_operators(h, w):
    hw = h * w
    hs = jnp.arange(hw) // w
    ws = jnp.arange(hw) % w
    ah = (hs[:, None] == jnp.arange(h)[None, :]).astype(jnp.float32) / w   # (HW, H)
    aw = (ws[:, None] == jnp.arange(w)[None, :]).astype(jnp.float32) / h   # (HW, W)
    p = jnp.concatenate([ah, aw], axis=1)                                   # (HW, H+W)
    eh = (jnp.arange(h)[:, None] == hs[None, :]).astype(jnp.float32)        # (H, HW)
    ew = (jnp.arange(w)[:, None] == ws[None, :]).astype(jnp.float32)        # (W, HW)
    h_pad = _round_up(h, 8)                                                  # align Ew rows
    e = jnp.zeros((h_pad + w, hw), jnp.float32)
    e = e.at[:h, :].set(eh)
    e = e.at[h_pad:h_pad + w, :].set(ew)
    return p, e, h_pad


# ----------------------------------------------------------------------------
# Pack all small param-derived constants into ONE lane-dense array.
# ----------------------------------------------------------------------------
def _pack_blocks(blocks):
    lane = max(int(a.shape[1]) for a in blocks)
    parts, offs, row = [], [], 0
    for a in blocks:
        r, cdim = int(a.shape[0]), int(a.shape[1])
        rp = _round_up(r, 8)
        buf = jnp.zeros((rp, lane), jnp.float32).at[:r, :cdim].set(
            a.astype(jnp.float32))
        parts.append(buf)
        offs.append(row)
        row += rp
    return jnp.concatenate(parts, axis=0), tuple(offs)


def _build_param_constants(params, group, c, rank):
    g, R, C = group, rank, c
    GC, gR, gRC = g * C, g * R, g * R * C
    Wc, bc = params["Wc"], params["bc"]
    Wh, bh = params["Wh"], params["bh"]
    Ww, bw = params["Ww"], params["bw"]

    whbd = jnp.zeros((gR, GC), jnp.float32)
    wwbd = jnp.zeros((gR, GC), jnp.float32)
    tbd = jnp.zeros((gRC, GC), jnp.float32)
    mbd = jnp.zeros((gRC, gR), jnp.float32)
    wcbd = jnp.zeros((GC, gRC), jnp.float32)
    bcm = jnp.full((GC, gR), -1e30, jnp.float32)    # kills off-diag sigmoid
    gmo = jnp.zeros((C, GC), jnp.float32)
    eye_c = jnp.eye(C, dtype=jnp.float32)
    for gi in range(g):
        whbd = whbd.at[gi * R:(gi + 1) * R, gi * C:(gi + 1) * C].set(Wh)
        wwbd = wwbd.at[gi * R:(gi + 1) * R, gi * C:(gi + 1) * C].set(Ww)
        gmo = gmo.at[:, gi * C:(gi + 1) * C].set(eye_c / g)
        for r in range(R):
            base = gi * R * C + r * C
            tbd = tbd.at[base:base + C, gi * C:(gi + 1) * C].set(eye_c)
            mbd = mbd.at[base:base + C, gi * R + r].set(1.0)
            wcbd = wcbd.at[gi * C:(gi + 1) * C, base:base + C].set(Wc[r])
            bcm = bcm.at[gi * C:(gi + 1) * C, gi * R + r].set(bc[r])
    bhc = jnp.tile(bh[:, None], (g, 1)).astype(jnp.float32)    # (gR, 1)
    bwc = jnp.tile(bw[:, None], (g, 1)).astype(jnp.float32)    # (gR, 1)

    blocks = [whbd, wwbd, bhc, bwc, tbd, mbd, wcbd, bcm, gmo]
    return _pack_blocks(blocks)


# ----------------------------------------------------------------------------
# Parameters (deterministic synthetic init; shapes follow the per-rank 1x1
# convs of the reconstructed DRTLM).
# ----------------------------------------------------------------------------
def init_params(key, channel, rank):
    ks = jax.random.split(key, 6)
    s = 0.1
    return dict(
        Wc=s * jax.random.normal(ks[0], (rank, channel, channel), jnp.float32),
        bc=s * jax.random.normal(ks[1], (rank, channel), jnp.float32),
        Wh=s * jax.random.normal(ks[2], (rank, channel), jnp.float32),
        bh=s * jax.random.normal(ks[3], (rank,), jnp.float32),
        Ww=s * jax.random.normal(ks[4], (rank, channel), jnp.float32),
        bw=s * jax.random.normal(ks[5], (rank,), jnp.float32),
    )


# ----------------------------------------------------------------------------
# LD.forward(spaspe_input, b)
# ----------------------------------------------------------------------------
def ld_forward(spaspe_input, b, params, rank):
    bg, c, h, w = spaspe_input.shape
    if bg % b != 0:
        raise ValueError(f"leading dim {bg} is not divisible by b={b}")
    g = bg // b
    hw = h * w
    GC = g * c

    # '(b g) c h w' -> (b, g*c, h*w): lane-dense, g*C sublanes per image stack.
    x = spaspe_input.reshape(b, GC, hw)
    p_op, e_op, h_pad = _pool_expand_operators(h, w)
    smalls, offs = _build_param_constants(params, g, c, rank)

    kern = functools.partial(_ld_fused_kernel, h=h, w=w, h_pad=h_pad, c=c,
                             group=g, rank=rank, offs=offs)

    # Footprint-derived VMEM limit, capped below v7x's 64 MiB physical budget.
    f32b = 4
    need = f32b * (2 * GC * hw + 2 * c * hw + 2 * int(p_op.size)
                   + 2 * int(e_op.size) + 2 * int(smalls.size) + 4 * GC * hw)
    vmem_limit = int(min(max(4 * need, 8 << 20), 32 << 20))

    const2 = lambda bi: (0, 0)
    out = pl.pallas_call(
        kern,
        grid=(b,),
        in_specs=[
            pl.BlockSpec((1, GC, hw), lambda bi: (bi, 0, 0)),   # x, read once
            pl.BlockSpec(tuple(p_op.shape), const2),            # pooling operator
            pl.BlockSpec(tuple(e_op.shape), const2),            # expansion operator
            pl.BlockSpec(tuple(smalls.shape), const2),          # packed small consts
        ],
        out_specs=pl.BlockSpec((1, c, hw), lambda bi: (bi, 0, 0)),
        out_shape=jax.ShapeDtypeStruct((b, c, hw), jnp.float32),
        compiler_params=pltpu.CompilerParams(
            dimension_semantics=("parallel",),
            vmem_limit_bytes=vmem_limit,
        ),
    )(x, p_op, e_op, smalls)
    return out.reshape(b, c, h, w)


# ----------------------------------------------------------------------------
# Pure-JAX reference (mirrors the reconstructed PyTorch semantics exactly).
# ----------------------------------------------------------------------------
def ld_reference(x, b, params, rank):
    bg, c, h, w = x.shape
    g = bg // b
    xc = x.mean(axis=(2, 3))
    xh = x.mean(axis=3)
    xw = x.mean(axis=2)
    att = jnp.zeros_like(x)
    for r in range(rank):
        cv = jax.nn.sigmoid(xc @ params["Wc"][r].T + params["bc"][r])
        hv = jax.nn.sigmoid(jnp.einsum("bch,c->bh", xh, params["Wh"][r]) + params["bh"][r])
        wv = jax.nn.sigmoid(jnp.einsum("bcw,c->bw", xw, params["Ww"][r]) + params["bw"][r])
        att = att + cv[:, :, None, None] * hv[:, None, :, None] * wv[:, None, None, :]
    att = att / rank
    out = x * att + x
    return out.reshape(b, g, c, h, w).mean(axis=1)


if __name__ == "__main__":
    B, G, C, H, W, RANK = 2, 2, 4, 16, 16, 4

    key = jax.random.PRNGKey(0)
    k_x, k_p = jax.random.split(key)
    spaspe_input = jax.random.normal(k_x, (B * G, C, H, W), jnp.float32)
    params = init_params(k_p, C, RANK)

    out = jax.block_until_ready(ld_forward(spaspe_input, B, params, RANK))

    ref = ld_reference(spaspe_input, B, params, RANK)
    np.testing.assert_allclose(np.asarray(out), np.asarray(ref), rtol=1e-4, atol=1e-5)
    assert out.shape == (B, C, H, W)

    print("KERNEL_OK")
</pallas_src>

<mosaic_0001>
module attributes {stable_mosaic.version = 11 : i64} {
  func.func @_ld_fused_kernel(%arg0: i32, %arg1: memref<1x8x256xf32, #tpu.memory_space<vmem>>, %arg2: memref<256x32xf32, #tpu.memory_space<vmem>>, %arg3: memref<32x256xf32, #tpu.memory_space<vmem>>, %arg4: memref<120x32xf32, #tpu.memory_space<vmem>>, %arg5: memref<1x4x256xf32, #tpu.memory_space<vmem>>) attributes {dimension_semantics = [#tpu.dimension_semantics<parallel>], iteration_bounds = array<i64: 2>, scalar_prefetch = 0 : i64, scratch_operands = 0 : i64, tpu.core_type = #tpu.core_type<tc>, window_params = [{transform_indices = @transform_0, window_bounds = array<i64: 1, 8, 256>}, {pipeline_mode = #tpu.pipeline_mode<synchronous>, transform_indices = @transform_1, window_bounds = array<i64: 256, 32>}, {pipeline_mode = #tpu.pipeline_mode<synchronous>, transform_indices = @transform_2, window_bounds = array<i64: 32, 256>}, {pipeline_mode = #tpu.pipeline_mode<synchronous>, transform_indices = @transform_3, window_bounds = array<i64: 120, 32>}, {transform_indices = @transform_4, window_bounds = array<i64: 1, 4, 256>}]} {
    %c0 = arith.constant 0 : index
    %c0_0 = arith.constant 0 : index
    %c0_1 = arith.constant 0 : index
    %0 = vector.load %arg1[%c0, %c0_0, %c0_1] : memref<1x8x256xf32, #tpu.memory_space<vmem>>, vector<1x8x256xf32>
    %1 = vector.shape_cast %0 : vector<1x8x256xf32> to vector<8x256xf32>
    %c0_2 = arith.constant 0 : index
    %c0_3 = arith.constant 0 : index
    %2 = vector.load %arg4[%c0_2, %c0_3] : memref<120x32xf32, #tpu.memory_space<vmem>>, vector<120x32xf32>
    %3 = vector.extract_strided_slice %2 {offsets = [0, 0], sizes = [8, 8], strides = [1, 1]} : vector<120x32xf32> to vector<8x8xf32>
    %4 = vector.extract_strided_slice %2 {offsets = [8, 0], sizes = [8, 8], strides = [1, 1]} : vector<120x32xf32> to vector<8x8xf32>
    %5 = vector.extract_strided_slice %2 {offsets = [16, 0], sizes = [8, 1], strides = [1, 1]} : vector<120x32xf32> to vector<8x1xf32>
    %6 = vector.extract_strided_slice %2 {offsets = [24, 0], sizes = [8, 1], strides = [1, 1]} : vector<120x32xf32> to vector<8x1xf32>
    %7 = vector.extract_strided_slice %2 {offsets = [32, 0], sizes = [32, 8], strides = [1, 1]} : vector<120x32xf32> to vector<32x8xf32>
    %8 = vector.extract_strided_slice %2 {offsets = [64, 0], sizes = [32, 8], strides = [1, 1]} : vector<120x32xf32> to vector<32x8xf32>
    %9 = vector.extract_strided_slice %2 {offsets = [96, 0], sizes = [8, 32], strides = [1, 1]} : vector<120x32xf32> to vector<8x32xf32>
    %10 = vector.extract_strided_slice %2 {offsets = [104, 0], sizes = [8, 8], strides = [1, 1]} : vector<120x32xf32> to vector<8x8xf32>
    %11 = vector.extract_strided_slice %2 {offsets = [112, 0], sizes = [4, 8], strides = [1, 1]} : vector<120x32xf32> to vector<4x8xf32>
    %c0_4 = arith.constant 0 : index
    %c0_5 = arith.constant 0 : index
    %12 = vector.load %arg2[%c0_4, %c0_5] : memref<256x32xf32, #tpu.memory_space<vmem>>, vector<256x32xf32>
    %cst = arith.constant dense<0.000000e+00> : vector<8x32xf32>
    %13 = tpu.matmul %1, %12, %cst {dimension_numbers = #tpu.dot_dimension_numbers<[1], [0], [0], [1], [0, 0, 1, 1], [], []>} : vector<8x256xf32>, vector<256x32xf32>, vector<8x32xf32> -> vector<8x32xf32>
    %14 = vector.extract_strided_slice %13 {offsets = [0, 0], sizes = [8, 16], strides = [1, 1]} : vector<8x32xf32> to vector<8x16xf32>
    %15 = vector.extract_strided_slice %13 {offsets = [0, 16], sizes = [8, 16], strides = [1, 1]} : vector<8x32xf32> to vector<8x16xf32>
    %cst_6 = arith.constant dense<0.000000e+00> : vector<8xf32>
    %16 = vector.multi_reduction <add>, %14, %cst_6 [1] : vector<8x16xf32> to vector<8xf32>
    %17 = vector.shape_cast %16 : vector<8xf32> to vector<8x1xf32>
    %cst_7 = arith.constant 1.600000e+01 : f32
    %18 = vector.broadcast %cst_7 : f32 to vector<8x1xf32>
    %19 = arith.divf %17, %18 : vector<8x1xf32>
    %cst_8 = arith.constant dense<0.000000e+00> : vector<8x16xf32>
    %20 = tpu.matmul %3, %14, %cst_8 {dimension_numbers = #tpu.dot_dimension_numbers<[1], [0], [0], [1], [0, 0, 1, 1], [], []>} : vector<8x8xf32>, vector<8x16xf32>, vector<8x16xf32> -> vector<8x16xf32>
    %21 = vector.broadcast %5 : vector<8x1xf32> to vector<8x16xf32>
    %22 = arith.addf %20, %21 : vector<8x16xf32>
    %23 = arith.negf %22 : vector<8x16xf32>
    %24 = math.exp %23 : vector<8x16xf32>
    %cst_9 = arith.constant 1.000000e+00 : f32
    %25 = vector.broadcast %cst_9 : f32 to vector<8x16xf32>
    %26 = arith.addf %25, %24 : vector<8x16xf32>
    %27 = arith.divf %25, %26 : vector<8x16xf32>
    %cst_10 = arith.constant dense<0.000000e+00> : vector<8x16xf32>
    %28 = tpu.matmul %4, %15, %cst_10 {dimension_numbers = #tpu.dot_dimension_numbers<[1], [0], [0], [1], [0, 0, 1, 1], [], []>} : vector<8x8xf32>, vector<8x16xf32>, vector<8x16xf32> -> vector<8x16xf32>
    %29 = vector.broadcast %6 : vector<8x1xf32> to vector<8x16xf32>
    %30 = arith.addf %28, %29 : vector<8x16xf32>
    %31 = arith.negf %30 : vector<8x16xf32>
    %32 = math.exp %31 : vector<8x16xf32>
    %cst_11 = arith.constant 1.000000e+00 : f32
    %33 = vector.broadcast %cst_11 : f32 to vector<8x16xf32>
    %34 = arith.addf %33, %32 : vector<8x16xf32>
    %35 = arith.divf %33, %34 : vector<8x16xf32>
    %c0_12 = arith.constant 0 : index
    %c0_13 = arith.constant 0 : index
    %36 = vector.load %arg3[%c0_12, %c0_13] : memref<32x256xf32, #tpu.memory_space<vmem>>, vector<32x256xf32>
    %37 = vector.extract_strided_slice %36 {offsets = [0, 0], sizes = [16, 256], strides = [1, 1]} : vector<32x256xf32> to vector<16x256xf32>
    %cst_14 = arith.constant dense<0.000000e+00> : vector<8x256xf32>
    %38 = tpu.matmul %27, %37, %cst_14 {dimension_numbers = #tpu.dot_dimension_numbers<[1], [0], [0], [1], [0, 0, 1, 1], [], []>} : vector<8x16xf32>, vector<16x256xf32>, vector<8x256xf32> -> vector<8x256xf32>
    %39 = vector.extract_strided_slice %36 {offsets = [16, 0], sizes = [16, 256], strides = [1, 1]} : vector<32x256xf32> to vector<16x256xf32>
    %cst_15 = arith.constant dense<0.000000e+00> : vector<8x256xf32>
    %40 = tpu.matmul %35, %39, %cst_15 {dimension_numbers = #tpu.dot_dimension_numbers<[1], [0], [0], [1], [0, 0, 1, 1], [], []>} : vector<8x16xf32>, vector<16x256xf32>, vector<8x256xf32> -> vector<8x256xf32>
    %41 = arith.mulf %38, %40 : vector<8x256xf32>
    %cst_16 = arith.constant dense<0.000000e+00> : vector<32x1xf32>
    %42 = tpu.matmul %7, %19, %cst_16 {dimension_numbers = #tpu.dot_dimension_numbers<[1], [0], [0], [1], [0, 0, 1, 1], [], []>} : vector<32x8xf32>, vector<8x1xf32>, vector<32x1xf32> -> vector<32x1xf32>
    %43 = vector.broadcast %42 : vector<32x1xf32> to vector<32x8xf32>
    %44 = arith.mulf %43, %8 : vector<32x8xf32>
    %cst_17 = arith.constant dense<0.000000e+00> : vector<8x8xf32>
    %45 = tpu.matmul %9, %44, %cst_17 {dimension_numbers = #tpu.dot_dimension_numbers<[1], [0], [0], [1], [0, 0, 1, 1], [], []>} : vector<8x32xf32>, vector<32x8xf32>, vector<8x8xf32> -> vector<8x8xf32>
    %46 = arith.addf %45, %10 : vector<8x8xf32>
    %47 = arith.negf %46 : vector<8x8xf32>
    %48 = math.exp %47 : vector<8x8xf32>
    %cst_18 = arith.constant 1.000000e+00 : f32
    %49 = vector.broadcast %cst_18 : f32 to vector<8x8xf32>
    %50 = arith.addf %49, %48 : vector<8x8xf32>
    %51 = arith.divf %49, %50 : vector<8x8xf32>
    %cst_19 = arith.constant dense<0.000000e+00> : vector<8x256xf32>
    %52 = tpu.matmul %51, %41, %cst_19 {dimension_numbers = #tpu.dot_dimension_numbers<[1], [0], [0], [1], [0, 0, 1, 1], [], []>} : vector<8x8xf32>, vector<8x256xf32>, vector<8x256xf32> -> vector<8x256xf32>
    %cst_20 = arith.constant 2.500000e-01 : f32
    %53 = vector.broadcast %cst_20 : f32 to vector<8x256xf32>
    %54 = arith.mulf %52, %53 : vector<8x256xf32>
    %cst_21 = arith.constant 1.000000e+00 : f32
    %55 = vector.broadcast %cst_21 : f32 to vector<8x256xf32>
    %56 = arith.addf %54, %55 : vector<8x256xf32>
    %57 = arith.mulf %1, %56 : vector<8x256xf32>
    %cst_22 = arith.constant dense<0.000000e+00> : vector<4x256xf32>
    %58 = tpu.matmul %11, %57, %cst_22 {dimension_numbers = #tpu.dot_dimension_numbers<[1], [0], [0], [1], [0, 0, 1, 1], [], []>} : vector<4x8xf32>, vector<8x256xf32>, vector<4x256xf32> -> vector<4x256xf32>
    %c0_23 = arith.constant 0 : index
    %c0_24 = arith.constant 0 : index
    %c0_25 = arith.constant 0 : index
    %59 = vector.load %arg5[%c0_23, %c0_24, %c0_25] : memref<1x4x256xf32, #tpu.memory_space<vmem>>, vector<1x4x256xf32>
    %60 = vector.shape_cast %59 : vector<1x4x256xf32> to vector<4x256xf32>
    %61 = vector.shape_cast %58 : vector<4x256xf32> to vector<1x4x256xf32>
    tpu.vector_store %arg5[%c0_23, %c0_24, %c0_25], %61 {strides = array<i32>} : memref<1x4x256xf32, #tpu.memory_space<vmem>>, vector<1x4x256xf32>,
    return
  }
  func.func @transform_0(%arg0: i32) -> (i32, i32, i32) {
    %c0_i32 = arith.constant 0 : i32
    %c0_i32_0 = arith.constant 0 : i32
    %c0_i32_1 = arith.constant 0 : i32
    return %arg0, %c0_i32, %c0_i32_0 : i32, i32, i32
  }
  func.func @transform_1(%arg0: i32) -> (i32, i32) {
    %c0_i32 = arith.constant 0 : i32
    %c0_i32_0 = arith.constant 0 : i32
    %c0_i32_1 = arith.constant 0 : i32
    return %c0_i32, %c0_i32_0 : i32, i32
  }
  func.func @transform_2(%arg0: i32) -> (i32, i32) {
    %c0_i32 = arith.constant 0 : i32
    %c0_i32_0 = arith.constant 0 : i32
    %c0_i32_1 = arith.constant 0 : i32
    return %c0_i32, %c0_i32_0 : i32, i32
  }
  func.func @transform_3(%arg0: i32) -> (i32, i32) {
    %c0_i32 = arith.constant 0 : i32
    %c0_i32_0 = arith.constant 0 : i32
    %c0_i32_1 = arith.constant 0 : i32
    return %c0_i32, %c0_i32_0 : i32, i32
  }
  func.func @transform_4(%arg0: i32) -> (i32, i32, i32) {
    %c0_i32 = arith.constant 0 : i32
    %c0_i32_0 = arith.constant 0 : i32
    %c0_i32_1 = arith.constant 0 : i32
    return %arg0, %c0_i32, %c0_i32_0 : i32, i32, i32
  }
}

</mosaic_0001>

<bundles_post_ra>
// kernel: tpu_custom_call.1
= control target key start
LH: loop header
LB: loop body
LE: loop exit
PB: predicated region body
PF: predicated region fallthrough
CT: control target
= control target key end

     0   :  { %9 = vsyncpa [#allocation3], 0  ;;  %s1632_s0 = inlined_call_operand.vmem [shape: f32[2,8,256], index: 0, kind: input, shape index: {}]   ;;  %s1633_s1 = inlined_call_operand.vmem [shape: f32[256,32], index: 1, kind: input, shape index: {}]   ;;  %s1634_s2 = inlined_call_operand.vmem [shape: f32[32,256], index: 2, kind: input, shape index: {}]   ;;  %s1635_s3 = inlined_call_operand.vmem [shape: f32[120,32], index: 3, kind: input, shape index: {}]   ;;  %s1636_s4 = inlined_call_operand.hbm [shape: f32[2,4,256], index: 4, kind: output, shape index: {}]  }
   0x1   :  { %11 = vsyncpa [#allocation3 + $0x1], 0  ;;  %s1341_s15 = smov 0   ;;  %s1343_s16 = smov 0  }
   0x2   :  { %s1345_s17 = smov 0   ;;  %s1347_s18 = smov 0  }
   0x3 LB: > { %s1362_s19 = sadd.s32 4294967295, %s1309_s18   ;;  %s1086_s20 = sadd.s32 4294967294, %s1309_s18   ;;  %s1309_s18 = sphi %s1347_s18, %s1642_s18   ;;  %s1305_s17 = sphi %s1345_s17, %s1641_s17   ;;  %s1301_s16 = sphi %s1343_s16, %s1640_s16   ;;  %s1297_s15 = sphi %s1341_s15, %s1639_s15  }
   0x4   : > { %s1366_s21 = sadd.s32 1, %s1309_s18   ;;  %s113_s22 = sadd.s32 1, %s1305_s17 }
   0x5   : > { %s110_s23 = ssub.s32 %s1309_s18, %s1366_s21  ;;  %p123_p0 = scmp.ne.s32.totalorder %s1305_s17, %s1301_s16 }
   0x6   : > { %p111_p1 = scmp.eq.s32.totalorder %s110_s23, 0  ;;  %p124_p2 = scmp.eq.s32.totalorder %s1362_s19, 1 }
   0x7   : > { %p129_p3 = scmp.ne.s32.totalorder %s1301_s16, %s1297_s15  ;;  %p130_p4 = scmp.eq.s32.totalorder %s1086_s20, 1 }
   0x8   : > { %s1377_s24 = scalar_select %p111_p1, %s1305_s17, %s113_s22  }
   0x9   : > { %p1379_p5 = por %p124_p2, %p123_p0  ;;  %p1383_p6 = por %p130_p4, %p129_p3 }
   0xa   : > { %p1089_p7 = scmp.ge.s32.totalorder %s1309_s18, 1  ;;  %p165_p8 = scmp.lt.s32.totalorder %s1309_s18, 3 }
   0xc   : > { %p166_p9 = pnand %p1089_p7, %p165_p8 }
   0xd   : > { %p191_p10 = scmp.lt.s32.totalorder (!%p166_p9), %s1362_s19, 1  ;;  %s188_s23 = sand.u32 (!%p166_p9), 1, %s1301_s16  }
   0xe   : > { %169 = sbr.rel (%p166_p9) target bundleno = 1568 (0x620), region = 36  ;;  %s1090_s27 = sshll.u32 (!%p166_p9), %s188_s23, 3 }
   0xf   : > { %s1113_s28 = sshll.u32 (!%p166_p9), %s1362_s19, 7  ;;  %s190_s29 = scalar_lea.vmem (!%p166_p9), [#allocation2], %s1090_s27 }
  0x10   : > { %s1027_s30 = sshll.u32 (!%p166_p9), %s190_s29, 4  ;;  %s1025_s7 = scalar_lea.hbm (!%p166_p9), %s1636_s4, %s1113_s28  ;;  %s1028_s30 = int_to_ptr.vmem [resolvable:$true] %s1027_s30 }
  0x11   : > { %s1249_s9 = scalar_lea.vmem (!%p166_p9), %s1028_s30, 128  ;;  %s1315_s10 = smov (!%p166_p9), [#allocation2]  }
  0x12   : > { %p1250_p11 = scmp.ne.s32.totalorder (!%p166_p9), %s1028_s30, %s1249_s9 }
  0x13   : > { %v244_v0 = vld [vmem:[%s1633_s1 + $0xf8] sm:$0xff]  ;;  %v243_v2 = vld [vmem:[%s1633_s1 + $0xf0] sm:$0xff]  ;;  %v1311_v4 = vmov 0   ;;  %v242_v5 = vld [vmem:[%s1633_s1 + $0xe8] sm:$0xff]  ;;  %s192_s11 = scalar_select %p191_p10, %s1362_s19, 1  ;;  %v1312_v36 = vmov 0.0  }
  0x14   : > { %v228_v1 = vld [vmem:[%s1633_s1 + $0x78] sm:$0xff]  ;;  %1114 = vmatprep.subr.mxu0 %v244_v0  ;;  %v227_v3 = vld [vmem:[%s1633_s1 + $0x70] sm:$0xff]  ;;  %1236 = vset.pattern.permute.xlu1 %v1311_v4  ;;  %v226_v6 = vld [vmem:[%s1633_s1 + $0x68] sm:$0xff]  ;;  %vm1313_vm0 = vmmov 0   ;;  %vm315_vm1 = vcmask 130048   ;;  %vm326_vm2 = vcmask 64512   ;;  %p1251_p12 = pnand %p1250_p11, %p1379_p5 }
  0x15   : > { %1115 = vmatpush3.msra.mxu0 %v228_v1  ;;  %1235 = vset.pattern.permute.xlu0 %v1311_v4  ;;  %v241_v7 = vld [vmem:[%s1633_s1 + $0xe0] sm:$0xff]  ;;  %s1112_s22 = sshll.u32 %s192_s11, 4  ;;  %v240_v9 = vld [vmem:[%s1633_s1 + $0xd8] sm:$0xff]  ;;  %v239_v11 = vld [vmem:[%s1633_s1 + $0xd0] sm:$0xff]  ;;  %vm773_vm3 = vcmask 261120   ;;  %s1253_s11 = sshll.u32 %s1315_s10, 4  ;;  %s1254_s11 = int_to_ptr.vmem [resolvable:$false] %s1253_s11 }
  0x16   : > { %1116 = vmatprep.subr.mxu0 %v243_v2  ;;  %v225_v8 = vld [vmem:[%s1633_s1 + $0x60] sm:$0xff]  ;;  %v224_v10 = vld [vmem:[%s1633_s1 + $0x58] sm:$0xff]  ;;  %s1424_s8 = scalar_lea.vmem %s1632_s0, %s1112_s22  ;;  %v223_v12 = vld [vmem:[%s1633_s1 + $0x50] sm:$0xff]  ;;  %1163 = vmatprep.subr.mxu1 %v1312_v36  ;;  %p1252_p13 = pneg %p1251_p12 }
  0x17   : > { %1117 = vmatpush3.msra.mxu0 %v227_v3  ;;  %v238_v13 = vld [vmem:[%s1633_s1 + $0xc8] sm:$0xff]  ;;  %v201_v16 = vld [vmem:[%s1635_s3 + $0x18] sm:$0xff]  ;;  %v237_v17 = vld [vmem:[%s1633_s1 + $0xc0] sm:$0xff]  ;;  %1165 = vmatprep.mubr.msk.f32.mxu1 %vm1313_vm0, %v1312_v36  ;;  %s1255_s19 = scalar_lea.vmem %s1254_s11, 256  ;;  %p1256_p0 = scmp.lt.s32.totalorder %s1028_s30, %s1254_s11 }
  0x18   : > { %1118 = vmatprep.subr.mxu0 %v242_v5  ;;  %v1436_v14 = vld [vmem:[%s1424_s8 + $0x8] sm:$0xff]  ;;  %408 = vperm.xlu1 %1236, %v201_v16   ;;  %v221_v18 = vld [vmem:[%s1633_s1 + $0x40] sm:$0xff]  ;;  %v236_v19 = vld [vmem:[%s1633_s1 + $0xb8] sm:$0xff]  ;;  %p1257_p1 = scmp.lt.s32.totalorder %s1255_s19, %s1249_s9 }
  0x19   : > { %1119 = vmatpush3.msra.mxu0 %v226_v6  ;;  %v222_v15 = vld [vmem:[%s1633_s1 + $0x48] sm:$0xff]  ;;  %309 = vmatprep.mubr.f32.mxu0 %v1436_v14  ;;  %v220_v20 = vld [vmem:[%s1633_s1 + $0x38] sm:$0xff]  ;;  %v235_v21 = vld [vmem:[%s1633_s1 + $0xb0] sm:$0xff] }
  0x1a   : > { %1120 = vmatprep.subr.mxu0 %v241_v7  ;;  %v219_v22 = vld [vmem:[%s1633_s1 + $0x30] sm:$0xff]  ;;  %v234_v23 = vld [vmem:[%s1633_s1 + $0xa8] sm:$0xff]  ;;  %v233_v25 = vld [vmem:[%s1633_s1 + $0xa0] sm:$0xff]  ;;  %p1258_p2 = por %p1257_p1, %p1256_p0 }
  0x1b   : > { %1121 = vmatpush3.msra.mxu0 %v225_v8  ;;  %v218_v24 = vld [vmem:[%s1633_s1 + $0x28] sm:$0xff]  ;;  %v217_v26 = vld [vmem:[%s1633_s1 + $0x20] sm:$0xff]  ;;  %v232_v27 = vld [vmem:[%s1633_s1 + $0x98] sm:$0xff] }
  0x1c   : > { %1122 = vmatprep.subr.mxu0 %v240_v9  ;;  %v216_v28 = vld [vmem:[%s1633_s1 + $0x18] sm:$0xff]  ;;  %v231_v29 = vld [vmem:[%s1633_s1 + $0x90] sm:$0xff]  ;;  %v230_v31 = vld [vmem:[%s1633_s1 + $0x88] sm:$0xff]  ;;  %p1259_p3 = pnand %p1258_p2, %p1252_p13 }
  0x1d   : > { %1123 = vmatpush3.msra.mxu0 %v224_v10  ;;  %v215_v30 = vld [vmem:[%s1633_s1 + $0x10] sm:$0xff]  ;;  %v214_v32 = vld [vmem:[%s1633_s1 + $0x8] sm:$0xff]  ;;  %v229_v33 = vld [vmem:[%s1633_s1 + $0x80] sm:$0xff] }
  0x1e   : > { %1124 = vmatprep.subr.mxu0 %v239_v11  ;;  %v213_v34 = vld [vmem:[%s1633_s1] sm:$0xff]  ;;  %v200_v42 = vld [vmem:[%s1635_s3 + $0x10] sm:$0xff]  ;;  %v199_v43 = vld [vmem:[%s1635_s3 + $0x8] sm:$0xff] }
  0x1f   : > { %1125 = vmatpush3.msra.mxu0 %v223_v12  ;;  %v1500_v35 = vld [vmem:[%s1424_s8] sm:$0xff]  ;;  %s1314_s8 = smov 112   ;;  %v497_v44 = vld [vmem:[%s1634_s2 + $0x18] sm:$0xff]  ;;  %v496_v46 = vld [vmem:[%s1634_s2 + $0x10] sm:$0xff] }
  0x20   : > { %1126 = vmatprep.subr.mxu0 %v238_v13  ;;  %v198_v40 = vld [vmem:[%s1635_s3] sm:$0xff]  ;;  %v495_v47 = vld [vmem:[%s1634_s2 + $0x8] sm:$0xff]  ;;  %v501_v49 = vld [vmem:[%s1634_s2 + $0x38] sm:$0xff] }
  0x21   : > { %1127 = vmatpush3.msra.mxu0 %v222_v15  ;;  %v494_v48 = vld [vmem:[%s1634_s2] sm:$0xff]  ;;  %v500_v58 = vld [vmem:[%s1634_s2 + $0x30] sm:$0xff]  ;;  %v499_v61 = vld [vmem:[%s1634_s2 + $0x28] sm:$0xff] }
  0x22   : > { %1128 = vmatprep.subr.mxu0 %v237_v17  ;;  %v498_v62 = vld [vmem:[%s1634_s2 + $0x20] sm:$0xff]  ;;  %v203_v8 = vld [vmem:[%s1635_s3 + $0x28] sm:$0xff]  ;;  %v204_v9 = vld [vmem:[%s1635_s3 + $0x30] sm:$0xff] }
  0x23   : > { %1129 = vmatpush3.msra.mxu0 %v221_v18  ;;  %v202_v6 = vld [vmem:[%s1635_s3 + $0x20] sm:$0xff]  ;;  %v205_v10 = vld [vmem:[%s1635_s3 + $0x38] sm:$0xff] }
  0x24   : > { %1130 = vmatprep.subr.mxu0 %v236_v19 }
  0x25   : > { %1131 = vmatpush3.msra.mxu0 %v220_v20 }
  0x26   : > { %1132 = vmatprep.subr.mxu0 %v235_v21 }
  0x27   : > { %1133 = vmatpush3.msra.mxu0 %v219_v22  ;;  %v209_v22 = vld [vmem:[%s1635_s3 + $0x58] sm:$0xff] }
  0x28   : > { %1134 = vmatprep.subr.mxu0 %v234_v23 }
  0x29   : > { %1135 = vmatpush3.msra.mxu0 %v218_v24 }
  0x2a   : > { %1136 = vmatprep.subr.mxu0 %v233_v25  ;;  %v208_v25 = vld [vmem:[%s1635_s3 + $0x50] sm:$0xff] }
  0x2b   : > { %1137 = vmatpush3.msra.mxu0 %v217_v26  ;;  %v207_v26 = vld [vmem:[%s1635_s3 + $0x48] sm:$0xff] }
  0x2c   : > { %1138 = vmatprep.subr.mxu0 %v232_v27 }
  0x2d   : > { %1139 = vmatpush3.msra.mxu0 %v216_v28 }
  0x2e   : > { %1140 = vmatprep.subr.mxu0 %v231_v29  ;;  %v206_v29 = vld [vmem:[%s1635_s3 + $0x40] sm:$0xff] }
  0x2f   : > { %1141 = vmatpush3.msra.mxu0 %v215_v30 }
  0x30   : > { %1142 = vmatprep.subr.mxu0 %v230_v31 }
  0x31   : > { %1143 = vmatpush3.msra.mxu0 %v214_v32 }
  0x32   : > { %1144 = vmatprep.subr.mxu0 %v229_v33  ;;  %v210_v33 = vld [vmem:[%s1635_s3 + $0x60] sm:$0xff] }
  0x33   : > { %1145 = vmatpush3.msra.mxu0 %v213_v34 }
  0x34   : > { %310 = vmatmul.mubr.f32.vlgmr.msra.gmra.mxu0 %v1500_v35 }
  0x93   : > { %v409_v57 = vpop.permute.xlu1 %408 }
  0xf4   : > { %v1146_v37 = vpop.f32.mrf.mxu0 }
  0xf6   : > { %v1147_v38 = vpop.f32.mrf.mxu0 }
  0xf7   : > { %v1148_v39 = vadd.f32 %v1147_v38, %v1146_v37  ;;  %v211_v37 = vld [vmem:[%s1635_s3 + $0x68] sm:$0xff] }
  0xf9   : > { %412 = vrot.lane.b32.xlu0 %v1148_v39, %s1314_s8  ;;  %1164 = vmatpush3.msra.mxu1 %v1148_v39  ;;  %v316_v41 = vsel %vm315_vm1, %v1148_v39, 0.0  ;;  %s1013_s8 = scalar_lea.sflag [#allocation3], %s188_s23 }
  0xfa   : > { %1166 = vmatmul.mubr.msk.f32.vlgmr.msra.gmra.mxu1 %vm326_vm2, %v198_v40  ;;  %317 = vadd.xlane.f32.xlu1 %v316_v41 }
  0xfb   : > { %1168 = vmatprep.subr.mxu1 %v1312_v36  ;;  %1170 = vmatprep.mubr.msk.f32.mxu1 %vm1313_vm0, %v1312_v36 }
  0xfd   : > { %323 = vperm.xlu0 %1235, %v200_v42  }
 0x16b   : > { %v413_v45 = vpop.permute.xlu0 %412 }
 0x16c   : > { %1169 = vmatpush3.msra.mxu1 %v413_v45 }
 0x16d   : > { %1171 = vmatmul.mubr.msk.f32.vlgmr.msra.gmra.mxu1 %vm326_vm2, %v199_v43  ;;  %533 = vmatprep.subr.mxu1 %v497_v44 }
 0x16e   : > { %534 = vmatpush1.msra.mxu1 %v496_v46  ;;  %569 = vmatprep.mubr.f32.mxu1 %v1312_v36 }
 0x16f   : > { %535 = vmatprep.subr.mxu1 %v495_v47 }
 0x170   : > { %536 = vmatpush1.msra.mxu1 %v494_v48 }
 0x171   : > { %607 = vmatprep.subr.mxu1 %v501_v49 }
 0x178   : > { %v324_v50 = vpop.permute.xlu0 %323 }
 0x183   : > { %v318_v60 = vpop.xlane.xlu1 %317 }
 0x184   : > { %v320_v63 = vmul.f32 0.0625, %v318_v60 }
 0x1ba   : > { %v396_v51 = vpop.f32.mrf.mxu1 }
 0x1bb   : > { %v397_v52 = vadd.f32 %v396_v51, %v324_v50 }
 0x1bc   : > { %v1167_v53 = vpop.f32.mrf.mxu1 }
 0x1bd   : > { %v1094_v54 = vmul.f32 -1.442695, %v397_v52  ;;  %v212_v53 = vld [vmem:[%s1635_s3 + $0x70] sm:$0xff] }
 0x1bf   : > { %1237 = vpow2.f32 %v1094_v54 }
 0x1cc   : > { %v1238_v55 = vpop.eup %1237 }
 0x1cd   : > { %v403_v56 = vadd.f32 1.0, %v1238_v55 }
 0x1cf   : > { %1239 = vrcp.f32 %v403_v56 }
 0x1dc   : > { %v1240_v59 = vpop.eup %1239 }
 0x1dd   : > { %1097 = vmatmul.mubr.msk.f32.vlgmr.msra.gmra.mxu1 %vm315_vm1, %v1240_v59 }
 0x1de   : > { %608 = vmatpush1.msra.mxu1 %v500_v58  ;;  %643 = vmatprep.mubr.f32.mxu1 %v1312_v36 }
 0x1df   : > { %609 = vmatprep.subr.mxu1 %v499_v61 }
 0x1e0   : > { %610 = vmatpush1.msra.mxu1 %v498_v62 }
 0x1e1   : > { %1173 = vmatprep.subr.mxu1 %v320_v63 }
 0x22d   : > { %v484_v0 = vpop.f32.mrf.mxu1 }
 0x22e   : > { %v485_v1 = vadd.f32 %v484_v0, %v409_v57 }
 0x22f   : > { %v1172_v2 = vpop.f32.mrf.mxu1 }
 0x230   : > { %v1096_v3 = vmul.f32 -1.442695, %v485_v1 }
 0x232   : > { %1241 = vpow2.f32 %v1096_v3 }
 0x23f   : > { %v1242_v4 = vpop.eup %1241 }
 0x240   : > { %v491_v5 = vadd.f32 1.0, %v1242_v4 }
 0x242   : > { %1243 = vrcp.f32 %v491_v5 }
 0x24f   : > { %v1244_v7 = vpop.eup %1243 }
 0x250   : > { %1098 = vmatmul.mubr.msk.f32.vlgmr.msra.gmra.mxu1 %vm315_vm1, %v1244_v7 }
 0x251   : > { %1174 = vmatpush3.msra.mxu1 %v320_v63  ;;  %1175 = vmatprep.mubr.msk.f32.mxu1 %vm326_vm2, %v202_v6 }
 0x252   : > { %1181 = vmatprep.subr.mxu1 %v1312_v36 }
 0x254   : > { %1176 = vmatmul.mubr.msk.f32.vlgmr.msra.gmra.mxu1 %vm326_vm2, %v203_v8 }
 0x255   : > { %1178 = vmatprep.mubr.msk.f32.mxu1 %vm326_vm2, %v204_v9 }
 0x258   : > { %1179 = vmatmul.mubr.msk.f32.gmra.mxu1 %vm326_vm2, %v205_v10 }
 0x259   : > { %1189 = vmatprep.mubr.msk.f32.mxu1 %vm1313_vm0, %v1312_v36 }
 0x29d   : > { %v571_v11 = vpop.f32.mrf.mxu1 }
 0x29f   : > { %v573_v12 = vpop.f32.mrf.mxu1 }
 0x310   : > { %v645_v13 = vpop.f32.mrf.mxu1 }
 0x311   : > { %v650_v34 = vmul.f32 %v645_v13, %v571_v11 }
 0x312   : > { %v647_v15 = vpop.f32.mrf.mxu1 }
 0x313   : > { %v651_v16 = vmul.f32 %v647_v15, %v573_v12 }
 0x314   : > { %v1177_v17 = vpop.f32.mrf.mxu1 }
 0x315   : > { %756 = vperm.xlu0 %1235, %v1177_v17  }
 0x316   : > { %v730_v18 = vpop.f32.mrf.mxu1 }
 0x318   : > { %v1180_v19 = vpop.f32.mrf.mxu1 }
 0x319   : > { %766 = vperm.xlu0 %1235, %v1180_v19  }
 0x31a   : > { %v740_v20 = vpop.f32.mrf.mxu1 }
 0x31d   : > { %761 = vperm.xlu0 %1235, %v740_v20  }
 0x321   : > { %751 = vperm.xlu0 %1235, %v730_v18  }
 0x390   : > { %v757_v21 = vpop.permute.xlu0 %756 }
 0x391   : > { %v770_v30 = vmul.f32 %v757_v21, %v207_v26 }
 0x394   : > { %v767_v23 = vpop.permute.xlu0 %766 }
 0x395   : > { %v772_v24 = vmul.f32 %v767_v23, %v209_v22 }
 0x397   : > { %1182 = vmatpush3.msra.mxu1 %v772_v24 }
 0x398   : > { %v762_v27 = vpop.permute.xlu0 %761  ;;  %1183 = vmatprep.subr.mxu1 %v1312_v36 }
 0x399   : > { %v771_v28 = vmul.f32 %v762_v27, %v208_v25 }
 0x39b   : > { %1184 = vmatpush3.msra.mxu1 %v771_v28 }
 0x39c   : > { %1185 = vmatprep.subr.mxu1 %v1312_v36  ;;  %v752_v31 = vpop.permute.xlu0 %751 }
 0x39d   : > { %v769_v32 = vmul.f32 %v752_v31, %v206_v29  ;;  %1186 = vmatpush3.msra.mxu1 %v770_v30 }
 0x39e   : > { %1187 = vmatprep.subr.mxu1 %v1312_v36 }
 0x39f   : > { %1188 = vmatpush3.msra.mxu1 %v769_v32 }
 0x3a0   : > { %1190 = vmatmul.mubr.msk.f32.vlgmr.msra.gmra.mxu1 %vm773_vm3, %v210_v33  ;;  %886 = vmatprep.subr.mxu1 %v651_v16 }
 0x3a1   : > { %887 = vmatpush1.msra.mxu1 %v650_v34  ;;  %920 = vmatprep.mubr.f32.mxu1 %v1312_v36 }
 0x460   : > { %v843_v38 = vpop.f32.mrf.mxu1 }
 0x461   : > { %v844_v39 = vadd.f32 %v843_v38, %v211_v37 }
 0x462   : > { %v1191_v40 = vpop.f32.mrf.mxu1 }
 0x463   : > { %v1104_v41 = vmul.f32 -1.442695, %v844_v39 }
 0x465   : > { %1245 = vpow2.f32 %v1104_v41 }
 0x472   : > { %v1246_v42 = vpop.eup %1245 }
 0x473   : > { %v850_v43 = vadd.f32 1.0, %v1246_v42 }
 0x475   : > { %1247 = vrcp.f32 %v850_v43 }
 0x482   : > { %v1248_v44 = vpop.eup %1247 }
 0x483   : > { %1105 = vmatmul.mubr.msk.f32.vlgmr.msra.gmra.mxu1 %vm326_vm2, %v1248_v44 }
 0x484   : > { %1000 = vmatprep.mubr.f32.mxu1 %v1312_v36 }
 0x543   : > { %v922_v45 = vpop.f32.mrf.mxu1 }
 0x544   : > { %v927_v46 = vmul.f32 0.25, %v922_v45 }
 0x545   : > { %v924_v47 = vpop.f32.mrf.mxu1 }
 0x546   : > { %v928_v48 = vmul.f32 0.25, %v924_v47  ;;  %v929_v49 = vadd.f32 1.0, %v927_v46 }
 0x548   : > { %v930_v50 = vadd.f32 1.0, %v928_v48  ;;  %v931_v52 = vmul.f32 %v929_v49, %v1500_v35 }
 0x54a   : > { %v932_v51 = vmul.f32 %v930_v50, %v1436_v14 }
 0x54c   : > { %966 = vmatprep.subr.mxu1 %v932_v51 }
 0x54d   : > { %967 = vmatpush1.msra.mxu1 %v931_v52 }
 0x54e   : > { %1106 = vmatmul.mubr.msk.f32.vlgmr.msra.gmra.mxu1 %vm326_vm2, %v212_v53 }
 0x60e   : > { %v1002_v36 = vpop.f32.mrf.mxu1 }
 0x610   : > { %v1004_v54 = vpop.f32.mrf.mxu1 }
 0x611   : > { %v1009_v55 = vcombine.low %v1002_v36, %v1004_v54 }
 0x613   : > { %1011 = vst [vmem:[%s190_s29] sm:$0xff] %v1009_v55 }
 0x614   : > { %1262 = shalt.err (!%p1259_p3)
}
 0x615   : > { %s1263_s12 = scalar_lea.hbm %s1025_s7, 128  ;;  %s1267_s20 = scalar_lea.hbm %s1636_s4, 256 }
 0x616   : > { %p1264_p4 = scmp.ne.s32.totalorder %s1025_s7, %s1263_s12  ;;  %p1268_p9 = scmp.lt.s32.totalorder %s1025_s7, %s1636_s4 }
 0x617   : > { %p1269_p10 = scmp.lt.s32.totalorder %s1267_s20, %s1263_s12 }
 0x618   : > { %p1265_p7 = pnand %p1264_p4, %p1379_p5 }
 0x619   : > { %p1270_p11 = por %p1269_p10, %p1268_p9 }
 0x61a   : > { %p1266_p8 = pneg %p1265_p7 }
 0x61c   : > { %p1271_p12 = pnand %p1270_p11, %p1266_p8 }
 0x61e   : > { %1274 = shalt.err (!%p1271_p12)
}
 0x61f   : > { %1192 = dma.vmem_to_hbm [thread:$0]  (%p1379_p5), %s1028_s30, 128, %s1025_s7, %s1013_s8  }
 0x620 PF: > { %p1198_p13 = scmp.ge.s32.totalorder %s1309_s18, 2  ;;  %s1039_s27 = sand.u32 1, %s1297_s15  }
 0x621   : > { %s1040_s28 = scalar_lea.sflag [#allocation3], %s1039_s27 }
 0x622   : > { %p1195_p0 = pnand %p1198_p13, %p1383_p6 }
 0x624   : > { %p1196_p1 = pneg %p1195_p0 }
 0x626   : > { %1292 = dma.done.wait (%p1196_p1), %s1040_s28, 128  }
 0x627   : > { %1294 = vsyncadd (%p1196_p1), %s1040_s28, 4294967168  ;;  %p14_p2 = scmp.ge.s32.totalorder %s1366_s21, 4   ;;  %s1639_s15 = smov %s1301_s16 }
 0x628   : > { %s1640_s16 = smov %s1305_s17  ;;  %s1641_s17 = smov %s1377_s24 }
 0x629   : > { %s1642_s18 = smov %s1366_s21  ;;  %16 = sbr.rel (!%p14_p2) target bundleno = 3 (0x3), region = 71 }
 0x62e   :  { %1045 = vsyncpa [#allocation3], 1 }
 0x62f   :  { %1047 = vsyncpa [#allocation3 + $0x1], 1 }

</bundles_post_ra>
